<compile_context>
chip_gen: v7x
topology: tpu7x:2x2x1
jax: 0.10.0
libtpu: 0.0.40
codegen_flags: <defaults>
</compile_context>

<pallas_src>
import functools

import jax
import jax.numpy as jnp
from jax.experimental import pallas as pl
from jax.experimental.pallas import tpu as pltpu


def _round_up(n, m=128):
    return ((n + m - 1) // m) * m


# ----------------------------------------------------------------------------
# Fused kernel: the whole Generator MLP in one invocation.
# ----------------------------------------------------------------------------
def _generator_kernel(layers, n_classes, output_dim,
                      z_ref, lab_ref, wlb_ref, wz_ref, o_ref):
    """layers: tuple of (k, n_pad, row_off) static metadata per Linear layer.

    wz_ref : (total_rows, 128) bf16 — every layer's (k, n_pad) z-weight split
             into n_pad//128 column blocks of shape (k, 128), stacked on rows.
    wlb_ref: (n_classes + 1, sum(n_pad)) f32 — [label weights ; bias row].
    """
    n_layers = len(layers)

    # One small f32 matmul + bias-row add covers the label term + bias of every
    # layer (K = n_classes, negligible MXU cost; exact f32 bias).
    wlb = wlb_ref[...]
    lb = jnp.dot(lab_ref[...], wlb[:n_classes, :],
                 preferred_element_type=jnp.float32)
    lb = lb + wlb[n_classes:, :]                       # (B, sum(n_pad)) f32

    x = z_ref[...]                                     # (B, latent_dim) f32
    col = 0
    for i, (k, n_pad, row_off) in enumerate(layers):
        xb = x.astype(jnp.bfloat16)                    # bf16 operands, f32 acc
        blocks = []
        r = row_off
        for _ in range(n_pad // 128):
            w_blk = wz_ref[r:r + k, :]                 # (k, 128) bf16, static slice
            blocks.append(jnp.dot(xb, w_blk,
                                  preferred_element_type=jnp.float32))
            r += k
        y = blocks[0] if len(blocks) == 1 else jnp.concatenate(blocks, axis=-1)
        y = y + lb[:, col:col + n_pad]                 # f32, 128-aligned slice
        col += n_pad
        if i < n_layers - 1:
            # LeakyReLU(0.2) in f32; Dropout(p=0.0) is the identity.
            # TODO(synk): Dropout with p > 0 (training mode) not implemented.
            x = jnp.where(y > 0, y, 0.2 * y)
        else:
            o_ref[...] = jnp.tanh(y[:, :output_dim]).astype(o_ref.dtype)


# ----------------------------------------------------------------------------
# Parameter init (PyTorch-equivalent) + one-time kernel-layout preparation.
# ----------------------------------------------------------------------------
def init_generator_params(key, latent_dim, n_classes, output_dim, hidden_dims):
    """kaiming_normal_(mode='fan_in', nonlinearity='relu') weights, zero bias."""
    dims_in, dims_out = [], []
    prev = latent_dim
    for h in hidden_dims:
        dims_in.append(prev + n_classes)
        dims_out.append(h)
        prev = h
    dims_in.append(prev + n_classes)
    dims_out.append(output_dim)

    params = []
    for din, dout in zip(dims_in, dims_out):
        key, sub = jax.random.split(key)
        std = (2.0 / din) ** 0.5                        # sqrt(2 / fan_in)
        w = std * jax.random.normal(sub, (dout, din), dtype=jnp.float32)
        b = jnp.zeros((dout,), dtype=jnp.float32)
        params.append((w, b))
    return params


def prepare_generator_params(params, latent_dim, n_classes):
    """Transpose / split / pad / pack weights once into the fused-kernel layout."""
    wz_blocks, wl_cols, b_cols = [], [], []
    layers, dims = [], []
    row_off = 0
    k_in = latent_dim                 # layer-0 z input is passed unpadded (tiny K)
    for (w, b) in params:
        dout, din_tot = w.shape
        din = din_tot - n_classes
        n_pad = _round_up(dout)
        dims.append((din_tot, dout))

        w_t = jnp.transpose(w)                                       # (din_tot, dout)
        wz = jnp.pad(w_t[:din, :], ((0, k_in - din), (0, n_pad - dout)))
        wl = jnp.pad(w_t[din:, :], ((0, 0), (0, n_pad - dout)))
        bp = jnp.pad(b, (0, n_pad - dout))

        for j in range(n_pad // 128):          # zero-waste 128-wide column blocks
            wz_blocks.append(wz[:, j * 128:(j + 1) * 128])
        layers.append((k_in, n_pad, row_off))
        row_off += k_in * (n_pad // 128)
        wl_cols.append(wl)
        b_cols.append(bp)
        k_in = n_pad

    wz_packed = jnp.concatenate(wz_blocks, axis=0).astype(jnp.bfloat16)
    wlb = jnp.concatenate(
        [jnp.concatenate(wl_cols, axis=1),
         jnp.concatenate(b_cols, axis=0)[None, :]],
        axis=0).astype(jnp.float32)                                  # (C+1, sum Npad)

    return {
        "wz_packed": wz_packed,                # (total_rows, 128) bf16
        "wlb": wlb,                            # (n_classes+1, sum Npad) f32
        "layers": tuple(layers),
        "dims": tuple(dims),
        "n_classes": n_classes,
        "output_dim": params[-1][0].shape[0],
    }


def generator_forward(prep, z, labels):
    B = z.shape[0]
    out_dim = prep["output_dim"]

    flops = 2 * B * sum(di * do for di, do in prep["dims"])
    bytes_accessed = int(prep["wz_packed"].nbytes + prep["wlb"].nbytes
                         + z.nbytes + labels.nbytes + B * out_dim * 4)

    vmem = pl.BlockSpec(memory_space=pltpu.MemorySpace.VMEM)
    kernel = functools.partial(_generator_kernel, prep["layers"],
                               prep["n_classes"], out_dim)
    return pl.pallas_call(
        kernel,
        out_shape=jax.ShapeDtypeStruct((B, out_dim), jnp.float32),
        in_specs=[vmem, vmem, vmem, vmem],
        out_specs=vmem,
        cost_estimate=pl.CostEstimate(flops=flops,
                                      transcendentals=B * out_dim,
                                      bytes_accessed=bytes_accessed),
    )(z, labels, prep["wlb"], prep["wz_packed"])


if __name__ == "__main__":
    # Small shapes consistent with the module (default hidden_dims).
    batch = 8
    latent_dim = 16
    n_classes = 4
    output_dim = 64
    hidden_dims = [125, 250, 500]

    key = jax.random.PRNGKey(0)
    kp, kz, kl = jax.random.split(key, 3)

    params = init_generator_params(kp, latent_dim, n_classes, output_dim, hidden_dims)
    prep = prepare_generator_params(params, latent_dim, n_classes)

    z = jax.random.normal(kz, (batch, latent_dim), dtype=jnp.float32)
    cls = jax.random.randint(kl, (batch,), 0, n_classes)
    labels = jax.nn.one_hot(cls, n_classes, dtype=jnp.float32)   # one-hot class labels

    out = jax.block_until_ready(generator_forward(prep, z, labels))

    # Two pure-JAX references:
    #   ref_m : precision-matched (bf16 matmul operands, f32 accumulate) — tight.
    #   ref_f : plain f32 module semantics — loose (covers bf16 weight rounding).
    ref_m = z
    ref_f = z
    n_layers = len(params)
    for i, (w, b) in enumerate(params):
        din = w.shape[1] - n_classes
        w_t = jnp.transpose(w)
        y_m = jnp.dot(ref_m.astype(jnp.bfloat16),
                      w_t[:din, :].astype(jnp.bfloat16),
                      preferred_element_type=jnp.float32)
        y_m = y_m + jnp.dot(labels, w_t[din:, :],
                            preferred_element_type=jnp.float32) + b
        y_f = jnp.concatenate([ref_f, labels], axis=1) @ w.T + b
        if i < n_layers - 1:
            ref_m = jnp.where(y_m > 0, y_m, 0.2 * y_m)
            ref_f = jnp.where(y_f > 0, y_f, 0.2 * y_f)
        else:
            ref_m = jnp.tanh(y_m)
            ref_f = jnp.tanh(y_f)

    assert out.shape == (batch, output_dim), out.shape
    assert bool(jnp.all(jnp.isfinite(out)))
    assert bool(jnp.all(jnp.abs(out) <= 1.0 + 1e-6))              # tanh range
    assert bool(jnp.allclose(out, ref_m, atol=1e-2, rtol=1e-2)), \
        float(jnp.max(jnp.abs(out - ref_m)))
    assert bool(jnp.allclose(out, ref_f, atol=1e-1, rtol=1e-1)), \
        float(jnp.max(jnp.abs(out - ref_f)))
    print("KERNEL_OK")
</pallas_src>

<mosaic_0001>
module attributes {stable_mosaic.version = 11 : i64} {
  func.func @_generator_kernel(%arg0: memref<8x16xf32, #tpu.memory_space<vmem>>, %arg1: memref<8x4xf32, #tpu.memory_space<vmem>>, %arg2: memref<5x1024xf32, #tpu.memory_space<vmem>>, %arg3: memref<1808x128xbf16, #tpu.memory_space<vmem>>, %arg4: memref<8x64xf32, #tpu.memory_space<vmem>>) attributes {dimension_semantics = [], scalar_prefetch = 0 : i64, scratch_operands = 0 : i64, tpu.core_type = #tpu.core_type<tc>} {
    %c0 = arith.constant 0 : index
    %c0_0 = arith.constant 0 : index
    %0 = vector.load %arg2[%c0, %c0_0] : memref<5x1024xf32, #tpu.memory_space<vmem>>, vector<5x1024xf32>
    %c0_1 = arith.constant 0 : index
    %c0_2 = arith.constant 0 : index
    %1 = vector.load %arg1[%c0_1, %c0_2] : memref<8x4xf32, #tpu.memory_space<vmem>>, vector<8x4xf32>
    %2 = vector.extract_strided_slice %0 {offsets = [0, 0], sizes = [4, 1024], strides = [1, 1]} : vector<5x1024xf32> to vector<4x1024xf32>
    %cst = arith.constant dense<0.000000e+00> : vector<8x1024xf32>
    %3 = tpu.matmul %1, %2, %cst {dimension_numbers = #tpu.dot_dimension_numbers<[1], [0], [0], [1], [0, 0, 1, 1], [], []>} : vector<8x4xf32>, vector<4x1024xf32>, vector<8x1024xf32> -> vector<8x1024xf32>
    %4 = vector.extract_strided_slice %0 {offsets = [4, 0], sizes = [1, 1024], strides = [1, 1]} : vector<5x1024xf32> to vector<1x1024xf32>
    %5 = vector.broadcast %4 : vector<1x1024xf32> to vector<8x1024xf32>
    %6 = arith.addf %3, %5 : vector<8x1024xf32>
    %c0_3 = arith.constant 0 : index
    %c0_4 = arith.constant 0 : index
    %7 = vector.load %arg0[%c0_3, %c0_4] : memref<8x16xf32, #tpu.memory_space<vmem>>, vector<8x16xf32>
    %8 = arith.truncf %7 : vector<8x16xf32> to vector<8x16xbf16>
    %c0_5 = arith.constant 0 : index
    %c0_6 = arith.constant 0 : index
    %9 = vector.load %arg3[%c0_5, %c0_6] : memref<1808x128xbf16, #tpu.memory_space<vmem>>, vector<16x128xbf16>
    %cst_7 = arith.constant dense<0.000000e+00> : vector<8x128xf32>
    %10 = tpu.matmul %8, %9, %cst_7 {dimension_numbers = #tpu.dot_dimension_numbers<[1], [0], [0], [1], [0, 0, 1, 1], [], []>} : vector<8x16xbf16>, vector<16x128xbf16>, vector<8x128xf32> -> vector<8x128xf32>
    %11 = vector.extract_strided_slice %6 {offsets = [0, 0], sizes = [8, 128], strides = [1, 1]} : vector<8x1024xf32> to vector<8x128xf32>
    %12 = arith.addf %10, %11 : vector<8x128xf32>
    %cst_8 = arith.constant 0.000000e+00 : f32
    %13 = vector.broadcast %cst_8 : f32 to vector<8x128xf32>
    %14 = arith.cmpf ogt, %12, %13 : vector<8x128xf32>
    %cst_9 = arith.constant 2.000000e-01 : f32
    %15 = vector.broadcast %cst_9 : f32 to vector<8x128xf32>
    %16 = arith.mulf %15, %12 : vector<8x128xf32>
    %17 = arith.select %14, %12, %16 : vector<8x128xi1>, vector<8x128xf32>
    %18 = arith.truncf %17 : vector<8x128xf32> to vector<8x128xbf16>
    %c16 = arith.constant 16 : index
    %c0_10 = arith.constant 0 : index
    %19 = vector.load %arg3[%c16, %c0_10] : memref<1808x128xbf16, #tpu.memory_space<vmem>>, vector<128x128xbf16>
    %cst_11 = arith.constant dense<0.000000e+00> : vector<8x128xf32>
    %20 = tpu.matmul %18, %19, %cst_11 {dimension_numbers = #tpu.dot_dimension_numbers<[1], [0], [0], [1], [0, 0, 1, 1], [], []>} : vector<8x128xbf16>, vector<128x128xbf16>, vector<8x128xf32> -> vector<8x128xf32>
    %c144 = arith.constant 144 : index
    %c0_12 = arith.constant 0 : index
    %21 = vector.load %arg3[%c144, %c0_12] : memref<1808x128xbf16, #tpu.memory_space<vmem>>, vector<128x128xbf16>
    %cst_13 = arith.constant dense<0.000000e+00> : vector<8x128xf32>
    %22 = tpu.matmul %18, %21, %cst_13 {dimension_numbers = #tpu.dot_dimension_numbers<[1], [0], [0], [1], [0, 0, 1, 1], [], []>} : vector<8x128xbf16>, vector<128x128xbf16>, vector<8x128xf32> -> vector<8x128xf32>
    %23 = tpu.concatenate %20, %22 in 1 : vector<8x128xf32>, vector<8x128xf32> -> vector<8x256xf32>
    %24 = vector.extract_strided_slice %6 {offsets = [0, 128], sizes = [8, 256], strides = [1, 1]} : vector<8x1024xf32> to vector<8x256xf32>
    %25 = arith.addf %23, %24 : vector<8x256xf32>
    %cst_14 = arith.constant 0.000000e+00 : f32
    %26 = vector.broadcast %cst_14 : f32 to vector<8x256xf32>
    %27 = arith.cmpf ogt, %25, %26 : vector<8x256xf32>
    %cst_15 = arith.constant 2.000000e-01 : f32
    %28 = vector.broadcast %cst_15 : f32 to vector<8x256xf32>
    %29 = arith.mulf %28, %25 : vector<8x256xf32>
    %30 = arith.select %27, %25, %29 : vector<8x256xi1>, vector<8x256xf32>
    %31 = arith.truncf %30 : vector<8x256xf32> to vector<8x256xbf16>
    %c272 = arith.constant 272 : index
    %c0_16 = arith.constant 0 : index
    %32 = vector.load %arg3[%c272, %c0_16] : memref<1808x128xbf16, #tpu.memory_space<vmem>>, vector<256x128xbf16>
    %cst_17 = arith.constant dense<0.000000e+00> : vector<8x128xf32>
    %33 = tpu.matmul %31, %32, %cst_17 {dimension_numbers = #tpu.dot_dimension_numbers<[1], [0], [0], [1], [0, 0, 1, 1], [], []>} : vector<8x256xbf16>, vector<256x128xbf16>, vector<8x128xf32> -> vector<8x128xf32>
    %c528 = arith.constant 528 : index
    %c0_18 = arith.constant 0 : index
    %34 = vector.load %arg3[%c528, %c0_18] : memref<1808x128xbf16, #tpu.memory_space<vmem>>, vector<256x128xbf16>
    %cst_19 = arith.constant dense<0.000000e+00> : vector<8x128xf32>
    %35 = tpu.matmul %31, %34, %cst_19 {dimension_numbers = #tpu.dot_dimension_numbers<[1], [0], [0], [1], [0, 0, 1, 1], [], []>} : vector<8x256xbf16>, vector<256x128xbf16>, vector<8x128xf32> -> vector<8x128xf32>
    %c784 = arith.constant 784 : index
    %c0_20 = arith.constant 0 : index
    %36 = vector.load %arg3[%c784, %c0_20] : memref<1808x128xbf16, #tpu.memory_space<vmem>>, vector<256x128xbf16>
    %cst_21 = arith.constant dense<0.000000e+00> : vector<8x128xf32>
    %37 = tpu.matmul %31, %36, %cst_21 {dimension_numbers = #tpu.dot_dimension_numbers<[1], [0], [0], [1], [0, 0, 1, 1], [], []>} : vector<8x256xbf16>, vector<256x128xbf16>, vector<8x128xf32> -> vector<8x128xf32>
    %c1040 = arith.constant 1040 : index
    %c0_22 = arith.constant 0 : index
    %38 = vector.load %arg3[%c1040, %c0_22] : memref<1808x128xbf16, #tpu.memory_space<vmem>>, vector<256x128xbf16>
    %cst_23 = arith.constant dense<0.000000e+00> : vector<8x128xf32>
    %39 = tpu.matmul %31, %38, %cst_23 {dimension_numbers = #tpu.dot_dimension_numbers<[1], [0], [0], [1], [0, 0, 1, 1], [], []>} : vector<8x256xbf16>, vector<256x128xbf16>, vector<8x128xf32> -> vector<8x128xf32>
    %40 = tpu.concatenate %33, %35, %37, %39 in 1 : vector<8x128xf32>, vector<8x128xf32>, vector<8x128xf32>, vector<8x128xf32> -> vector<8x512xf32>
    %41 = vector.extract_strided_slice %6 {offsets = [0, 384], sizes = [8, 512], strides = [1, 1]} : vector<8x1024xf32> to vector<8x512xf32>
    %42 = arith.addf %40, %41 : vector<8x512xf32>
    %cst_24 = arith.constant 0.000000e+00 : f32
    %43 = vector.broadcast %cst_24 : f32 to vector<8x512xf32>
    %44 = arith.cmpf ogt, %42, %43 : vector<8x512xf32>
    %cst_25 = arith.constant 2.000000e-01 : f32
    %45 = vector.broadcast %cst_25 : f32 to vector<8x512xf32>
    %46 = arith.mulf %45, %42 : vector<8x512xf32>
    %47 = arith.select %44, %42, %46 : vector<8x512xi1>, vector<8x512xf32>
    %48 = arith.truncf %47 : vector<8x512xf32> to vector<8x512xbf16>
    %c1296 = arith.constant 1296 : index
    %c0_26 = arith.constant 0 : index
    %49 = vector.load %arg3[%c1296, %c0_26] : memref<1808x128xbf16, #tpu.memory_space<vmem>>, vector<512x128xbf16>
    %cst_27 = arith.constant dense<0.000000e+00> : vector<8x128xf32>
    %50 = tpu.matmul %48, %49, %cst_27 {dimension_numbers = #tpu.dot_dimension_numbers<[1], [0], [0], [1], [0, 0, 1, 1], [], []>} : vector<8x512xbf16>, vector<512x128xbf16>, vector<8x128xf32> -> vector<8x128xf32>
    %51 = vector.extract_strided_slice %6 {offsets = [0, 896], sizes = [8, 128], strides = [1, 1]} : vector<8x1024xf32> to vector<8x128xf32>
    %52 = arith.addf %50, %51 : vector<8x128xf32>
    %53 = vector.extract_strided_slice %52 {offsets = [0, 0], sizes = [8, 64], strides = [1, 1]} : vector<8x128xf32> to vector<8x64xf32>
    %54 = math.tanh %53 : vector<8x64xf32>
    %c0_28 = arith.constant 0 : index
    %c0_29 = arith.constant 0 : index
    %55 = vector.load %arg4[%c0_28, %c0_29] : memref<8x64xf32, #tpu.memory_space<vmem>>, vector<8x64xf32>
    tpu.vector_store %arg4[%c0_28, %c0_29], %54 {strides = array<i32>} : memref<8x64xf32, #tpu.memory_space<vmem>>, vector<8x64xf32>,
    return
  }
}

</mosaic_0001>

<bundles_post_ra>
// kernel: tpu_custom_call.1
= control target key start
LH: loop header
LB: loop body
LE: loop exit
PB: predicated region body
PF: predicated region fallthrough
CT: control target
= control target key end

     0   :  { %9 = vsyncpa [#allocation3], 0  ;;  %s2417_s0 = inlined_call_operand.vmem [shape: f32[8,16], index: 0, kind: input, shape index: {}]   ;;  %s2418_s1 = inlined_call_operand.vmem [shape: f32[8,4], index: 1, kind: input, shape index: {}]   ;;  %s2419_s2 = inlined_call_operand.hbm [shape: f32[5,1024], index: 2, kind: input, shape index: {}]   ;;  %s2420_s3 = inlined_call_operand.hbm [shape: bf16[1808,128], index: 3, kind: input, shape index: {}]   ;;  %s2421_s4 = inlined_call_operand.hbm [shape: f32[8,64], index: 4, kind: output, shape index: {}]  }
   0x1   :  { %10 = vsyncpa [#allocation6], 0 }
   0x2   :  { %11 = vsyncpa [#allocation4], 0  ;;  %s2244_s15 = smov [#allocation2]   ;;  %s2245_s17 = smov [#allocation5]  }
   0x3   :  { %s22_s16 = sshll.u32 %s2244_s15, 4  ;;  %s31_s18 = sshll.u32 %s2245_s17, 4  ;;  %s23_s16 = int_to_ptr.vmem [resolvable:$true] %s22_s16  ;;  %s2276_s18 = int_to_ptr.vmem [resolvable:$true] %s31_s18 }
   0x4   :  { %s2172_s21 = scalar_lea.hbm %s2419_s2, 1024 }
   0x5   :  { %p2173_p0 = scmp.ne.s32.totalorder %s2419_s2, %s2172_s21  ;;  %p2176_p1 = scmp.lt.u32.totalorder %s2172_s21, %s2419_s2 }
   0x7   :  { %p2178_p2 = pnand %p2176_p1, %p2173_p0 }
   0x9   :  { %2181 = shalt.err (!%p2178_p2)
}
   0xa   :  { %s2182_s26 = scalar_lea.vmem %s23_s16, 1024  ;;  %p2187_p4 = scmp.lt.s32.totalorder %s23_s16, %s23_s16 }
   0xb   :  { %p2183_p3 = scmp.ne.s32.totalorder %s23_s16, %s2182_s26  ;;  %p2188_p5 = scmp.lt.s32.totalorder %s2182_s26, %s2182_s26 }
   0xd   :  { %p2189_p6 = por %p2188_p5, %p2187_p4 }
   0xf   :  { %p2190_p7 = pnand %p2189_p6, %p2183_p3 }
  0x11   :  { %2193 = shalt.err (!%p2190_p7)
}
  0x12   :  { %25 = dma.hbm_to_vmem [thread:$0]  %s2419_s2, 1024, %s23_s16, [#allocation3]  }
  0x13   :  { %s2194_s5 = scalar_lea.hbm %s2420_s3, 14464 }
  0x14   :  { %p2195_p8 = scmp.ne.s32.totalorder %s2420_s3, %s2194_s5  ;;  %p2198_p9 = scmp.lt.u32.totalorder %s2194_s5, %s2420_s3 }
  0x16   :  { %p2200_p10 = pnand %p2198_p9, %p2195_p8 }
  0x18   :  { %2203 = shalt.err (!%p2200_p10)
}
  0x19   :  { %s2204_s10 = scalar_lea.vmem %s2276_s18, 14464  ;;  %p2209_p12 = scmp.lt.s32.totalorder %s2276_s18, %s2276_s18 }
  0x1a   :  { %p2205_p11 = scmp.ne.s32.totalorder %s2276_s18, %s2204_s10  ;;  %p2210_p13 = scmp.lt.s32.totalorder %s2204_s10, %s2204_s10 }
  0x1c   :  { %p2211_p0 = por %p2210_p13, %p2209_p12 }
  0x1e   :  { %p2212_p1 = pnand %p2211_p0, %p2205_p11 }
  0x20   :  { %2215 = shalt.err (!%p2212_p1)
}
  0x21   :  { %s2246_s2 = smov 64   ;;  %s2247_s11 = smov 4  }
  0x22   :  { %37 = dma.hbm_to_vmem [thread:$0]  %s2420_s3, 14464, %s2276_s18, [#allocation6], %s2246_s2, %s2246_s2, %s2247_s11  }
  0x23   :  { %2238 = dma.done.wait [#allocation3], 1024  }
  0x24   :  { %2239 = vsyncadd [#allocation3], 4294966272 }
  0x25   :  { %2240 = dma.done.wait [#allocation6], 14464  }
  0x26   :  { %2241 = vsyncadd [#allocation6], 4294952832  ;;  %v2248_v0 = vmov 0.0   ;;  %vm90_vm0 = vcmask 1043456   ;;  %v2309_v1 = vld [vmem:[#allocation2 + $0x8] sm:$0x1f]  ;;  %v54_v31 = vlaneseq }
  0x27   :  { %179 = vmatprep.mubr.f32.mxu0 %v2248_v0  ;;  %250 = vmatprep.mubr.f32.mxu1 %v2248_v0  ;;  %v2311_v2 = vld [vmem:[#allocation2] sm:$0x1f]  ;;  %vm86_vm1 = vcmask 31744   ;;  %v50_v4 = vld [vmem:[#allocation2 + $0x28] sm:$0x1f]  ;;  %vm2249_vm2 = vmmov 0  }
  0x28   :  { %v53_v3 = vld [vmem:[%s2418_s1] sm:$0xff]  ;;  %1722 = vmatprep.subr.msk.mxu0 %vm90_vm0, %v2309_v1  ;;  %v2322_v7 = vld [vmem:[#allocation2 + $0x18] sm:$0x1f]  ;;  %v2324_v8 = vld [vmem:[#allocation2 + $0x10] sm:$0x1f]  ;;  %vm409_vm3 = vcmask 130048  }
  0x29   :  { %v49_v5 = vld [vmem:[#allocation2 + $0x20] sm:$0x1f]  ;;  %1723 = vmatpush1.msk.msra.mxu0 %vm90_vm0, %v2311_v2  ;;  %1725 = vmatprep.subr.msk.mxu1 %vm90_vm0, %v2322_v7  ;;  %v52_v10 = vld [vmem:[#allocation2 + $0x38] sm:$0x1f]  ;;  %v51_v12 = vld [vmem:[#allocation2 + $0x30] sm:$0x1f] }
  0x2a   :  { %1724 = vmatmul.mubr.msk.f32.vlgmr.msra.gmra.mrb[0].mxu0 %vm86_vm1, %v53_v3  ;;  %1728 = vmatprep.subr.msk.mxu0 %vm90_vm0, %v50_v4  ;;  %v2053_v6 = vld [vmem:[#allocation5] sm:$0xff]   ;;  %v2055_v13 = vld [vmem:[#allocation5 + $0x48] sm:$0xff]   ;;  %v2056_v15 = vld [vmem:[#allocation5 + $0x10] sm:$0xff]   ;;  %v55_v32 = vshrl.u32 %v54_v31, 7  ;;  %vm1704_vm11 = vcmask 523264  }
  0x2b   :  { %1729 = vmatpush1.msk.msra.mxu0 %vm90_vm0, %v49_v5  ;;  %321 = vmatprep.mubr.f32.mxu0 %v2248_v0  ;;  %v399_v9 = vld [vmem:[%s2417_s0] sm:$0xff]  ;;  %v2054_v14 = vld [vmem:[#allocation5 + $0x8] sm:$0xff]   ;;  %v2057_v16 = vld [vmem:[#allocation5 + $0x50] sm:$0xff]   ;;  %s2250_s0 = smov [#allocation7]  }
  0x2c   :  { %2000 = vmatprep.subr.bf16.mxu0 %v2248_v0  ;;  %1726 = vmatpush1.msk.msra.mxu1 %vm90_vm0, %v2324_v8  ;;  %v400_v11 = vpack.c.bf16 %v399_v9, %v399_v9  ;;  %v2059_v17 = vld [vmem:[#allocation5 + $0x58] sm:$0xff]   ;;  %v2061_v19 = vld [vmem:[#allocation5 + $0x60] sm:$0xff]   ;;  %v2062_v21 = vld [vmem:[#allocation5 + $0x28] sm:$0xff]   ;;  %v2364_v33 = vsub.s32 4, %v55_v32  ;;  %s1712_s16 = sshll.u32 %s2250_s0, 4  ;;  %s1713_s16 = int_to_ptr.vmem [resolvable:$true] %s1712_s16 }
  0x2d   :  { %1727 = vmatmul.mubr.msk.f32.vlgmr.msra.gmra.mrb[0].mxu1 %vm86_vm1, %v53_v3  ;;  %1731 = vmatprep.subr.msk.mxu1 %vm90_vm0, %v52_v10  ;;  %v2058_v18 = vld [vmem:[#allocation5 + $0x18] sm:$0xff]   ;;  %v2060_v20 = vld [vmem:[#allocation5 + $0x20] sm:$0xff]   ;;  %v2063_v22 = vld [vmem:[#allocation5 + $0x68] sm:$0xff]   ;;  %s2216_s17 = scalar_lea.vmem %s1713_s16, 128  ;;  %p2221_p3 = scmp.lt.s32.totalorder %s1713_s16, %s1713_s16 }
  0x2e   :  { %1730 = vmatmul.mubr.msk.f32.vlgmr.msra.gmra.mrb[2].mxu0 %vm86_vm1, %v53_v3  ;;  %392 = vmatprep.mubr.f32.mxu1 %v2248_v0  ;;  %v2064_v23 = vld [vmem:[#allocation5 + $0x30] sm:$0xff]   ;;  %v2066_v25 = vld [vmem:[#allocation5 + $0x38] sm:$0xff]   ;;  %v2068_v27 = vld [vmem:[#allocation5 + $0x40] sm:$0xff]   ;;  %v57_v34 = vrot.slane %v2311_v2, %v2364_v33  ;;  %v61_v35 = vrot.slane %v2309_v1, %v2364_v33  ;;  %v69_v39 = vrot.slane %v2322_v7, %v2364_v33  ;;  %p2217_p2 = scmp.ne.s32.totalorder %s1713_s16, %s2216_s17  ;;  %p2222_p4 = scmp.lt.s32.totalorder %s2216_s17, %s2216_s17 }
  0x2f   :  { %2001 = vmatpush3.bf16.msra.mxu0 %v2053_v6  ;;  %2002 = vmatprep.mubr.msk.bf16.mxu0 %vm2249_vm2, %v2248_v0  ;;  %v2065_v24 = vld [vmem:[#allocation5 + $0x70] sm:$0xff]   ;;  %v2067_v26 = vld [vmem:[#allocation5 + $0x78] sm:$0xff]   ;;  %v2069_v28 = vld [vmem:[#allocation5 + $0x80] sm:$0xff]  }
  0x30   :  { %1732 = vmatpush1.msk.msra.mxu1 %vm90_vm0, %v51_v12  ;;  %2026 = vmatprep.subr.bf16.mxu0 %v2248_v0  ;;  %v2070_v29 = vld [vmem:[#allocation5 + $0xc8] sm:$0xff]   ;;  %v2074_v58 = vld [vmem:[#allocation5 + $0xd0] sm:$0xff]   ;;  %v2078_v62 = vld [vmem:[#allocation5 + $0xd8] sm:$0xff]   ;;  %p2223_p5 = por %p2222_p4, %p2221_p3 }
  0x31   :  { %2006 = vmatprep.subr.bf16.mxu1 %v2248_v0  ;;  %1733 = vmatmul.mubr.msk.f32.vlgmr.msra.gmra.mrb[2].mxu1 %vm86_vm1, %v53_v3  ;;  %v2071_v30 = vld [vmem:[#allocation5 + $0x148] sm:$0xff]   ;;  %v2075_v59 = vld [vmem:[#allocation5 + $0x150] sm:$0xff]   ;;  %v2079_v63 = vld [vmem:[#allocation5 + $0x158] sm:$0xff]  }
  0x32   :  { %2003 = vmatmul.mubr.msk.bf16.vlgmr.msra.gmra.mrb[4].mxu0 %vm409_vm3, %v400_v11  ;;  %2007 = vmatpush3.bf16.msra.mxu1 %v2054_v14  ;;  %v2072_v55 = vld [vmem:[#allocation5 + $0x88] sm:$0xff]   ;;  %v2076_v60 = vld [vmem:[#allocation5 + $0x90] sm:$0xff]   ;;  %v2081_v1 = vld [vmem:[#allocation5 + $0x118] sm:$0xff]   ;;  %p2224_p6 = pnand %p2223_p5, %p2217_p2 }
  0x33   :  { %2027 = vmatpush3.bf16.msra.mxu0 %v2055_v13  ;;  %2008 = vmatprep.subr.bf16.mxu1 %v2248_v0  ;;  %v2073_v56 = vld [vmem:[#allocation5 + $0x108] sm:$0xff]   ;;  %v2077_v61 = vld [vmem:[#allocation5 + $0x110] sm:$0xff]   ;;  %v2082_v2 = vld [vmem:[#allocation5 + $0xe0] sm:$0xff]  }
  0x34   :  { %2028 = vmatprep.subr.bf16.mxu0 %v2248_v0  ;;  %2022 = vmatprep.mubr.msk.bf16.mxu1 %vm2249_vm2, %v2248_v0  ;;  %v2083_v3 = vld [vmem:[#allocation5 + $0x160] sm:$0xff]   ;;  %v2086_v6 = vld [vmem:[#allocation5 + $0xe8] sm:$0xff]   ;;  %v2090_v11 = vld [vmem:[#allocation5 + $0xf0] sm:$0xff]  }
  0x35   :  { %2042 = vmatprep.mubr.msk.bf16.mxu0 %vm2249_vm2, %v2248_v0  ;;  %v2084_v4 = vld [vmem:[#allocation5 + $0xa0] sm:$0xff]   ;;  %v2087_v7 = vld [vmem:[#allocation5 + $0x168] sm:$0xff]   ;;  %v2091_v12 = vld [vmem:[#allocation5 + $0x170] sm:$0xff]  }
  0x36   :  { %2009 = vmatpush3.bf16.msra.mxu1 %v2056_v15  ;;  %v2085_v5 = vld [vmem:[#allocation5 + $0x120] sm:$0xff]   ;;  %v2088_v9 = vld [vmem:[#allocation5 + $0xa8] sm:$0xff]   ;;  %v2092_v13 = vld [vmem:[#allocation5 + $0xb0] sm:$0xff]  }
  0x37   :  { %2029 = vmatpush3.bf16.msra.mxu0 %v2057_v16  ;;  %2010 = vmatprep.subr.bf16.mxu1 %v2248_v0  ;;  %v2089_v10 = vld [vmem:[#allocation5 + $0x128] sm:$0xff]   ;;  %v2093_v14 = vld [vmem:[#allocation5 + $0x130] sm:$0xff]   ;;  %v2094_v15 = vld [vmem:[#allocation5 + $0xf8] sm:$0xff]  }
  0x38   :  { %2030 = vmatprep.subr.bf16.mxu0 %v2248_v0  ;;  %v2095_v16 = vld [vmem:[#allocation5 + $0x178] sm:$0xff]  }
  0x3a   :  { %2011 = vmatpush3.bf16.msra.mxu1 %v2058_v18  ;;  %v2097_v18 = vld [vmem:[#allocation5 + $0x138] sm:$0xff]  }
  0x3b   :  { %2031 = vmatpush3.bf16.msra.mxu0 %v2059_v17  ;;  %2012 = vmatprep.subr.bf16.mxu1 %v2248_v0  ;;  %v2096_v17 = vld [vmem:[#allocation5 + $0xb8] sm:$0xff]  }
  0x3c   :  { %2032 = vmatprep.subr.bf16.mxu0 %v2248_v0 }
  0x3e   :  { %2013 = vmatpush3.bf16.msra.mxu1 %v2060_v20  ;;  %v2099_v20 = vld [vmem:[#allocation5 + $0x180] sm:$0xff]  }
  0x3f   :  { %2033 = vmatpush3.bf16.msra.mxu0 %v2061_v19  ;;  %2014 = vmatprep.subr.bf16.mxu1 %v2248_v0  ;;  %v2098_v19 = vld [vmem:[#allocation5 + $0x100] sm:$0xff]  }
  0x40   :  { %2034 = vmatprep.subr.bf16.mxu0 %v2248_v0 }
  0x42   :  { %2015 = vmatpush3.bf16.msra.mxu1 %v2062_v21  ;;  %v2100_v21 = vld [vmem:[#allocation5 + $0xc0] sm:$0xff]  }
  0x43   :  { %2035 = vmatpush3.bf16.msra.mxu0 %v2063_v22  ;;  %2016 = vmatprep.subr.bf16.mxu1 %v2248_v0  ;;  %v2101_v22 = vld [vmem:[#allocation5 + $0x140] sm:$0xff]  }
  0x44   :  { %2036 = vmatprep.subr.bf16.mxu0 %v2248_v0 }
  0x46   :  { %2017 = vmatpush3.bf16.msra.mxu1 %v2064_v23  ;;  %v2102_v23 = vld [vmem:[#allocation5 + $0x1c8] sm:$0xff]  }
  0x47   :  { %2037 = vmatpush3.bf16.msra.mxu0 %v2065_v24  ;;  %2018 = vmatprep.subr.bf16.mxu1 %v2248_v0  ;;  %v2103_v24 = vld [vmem:[#allocation5 + $0x248] sm:$0xff]  }
  0x48   :  { %2038 = vmatprep.subr.bf16.mxu0 %v2248_v0 }
  0x4a   :  { %2019 = vmatpush3.bf16.msra.mxu1 %v2066_v25  ;;  %v65_v25 = vrot.slane %v2324_v8, %v2364_v33 }
  0x4b   :  { %2039 = vmatpush3.bf16.msra.mxu0 %v2067_v26  ;;  %2020 = vmatprep.subr.bf16.mxu1 %v2248_v0 }
  0x4c   :  { %2040 = vmatprep.subr.bf16.mxu0 %v2248_v0  ;;  %v2080_v0 = vld [vmem:[#allocation5 + $0x98] sm:$0xff]  }
  0x4e   :  { %2021 = vmatpush3.bf16.msra.mxu1 %v2068_v27 }
  0x4f   :  { %2041 = vmatpush3.bf16.msra.mxu0 %v2069_v28  ;;  %1868 = vmatprep.subr.bf16.mxu1 %v2070_v29 }
  0x50   :  { %1890 = vmatprep.subr.bf16.mxu0 %v2071_v30 }
  0xfd   :  { %v181_v36 = vpop.f32.mrb[0].mxu0 }
  0xfe   :  { %v182_v37 = vadd.f32 %v181_v36, %v57_v34  ;;  %v183_v38 = vpop.f32.mrb[1].mxu0 }
  0xff   :  { %v2372_v40 = vadd.f32 %v183_v38, %v61_v35 }
 0x100   :  { %v2376_v42 = vpop.f32.mrb[0].mxu1 }
 0x101   :  { %v2374_v41 = vpop.f32.mrb[2].mxu0  ;;  %v254_v44 = vpop.f32.mrb[1].mxu1  ;;  %v253_v26 = vadd.f32 %v2376_v42, %v65_v25  ;;  %v2144_v25 = vld [vmem:[#allocation5 + $0x2f0] sm:$0xff]  }
 0x102   :  { %v2378_v43 = vpop.f32.mrb[3].mxu0  ;;  %v2380_v45 = vadd.f32 %v254_v44, %v69_v39 }
 0x104   :  { %v2382_v49 = vpop.f32.mrb[2].mxu1 }
 0x105   :  { %v447_v46 = vpop.f32.mrb[4].mxu0  ;;  %v2384_v51 = vpop.f32.mrb[3].mxu1 }
 0x106   :  { %v448_v47 = vadd.f32 %v447_v46, %v182_v37  ;;  %v2004_v48 = vpop.f32.mrb[5].mxu0 }
 0x107   :  { %v450_v50 = vpop.f32.mrb[6].mxu0  ;;  %v2105_v48 = vld [vmem:[#allocation5 + $0x208] sm:$0xff]  }
 0x108   :  { %vm453_vm4 = vcmp.gt.f32.partialorder %v448_v47, 0.0  ;;  %v454_v52 = vmul.f32 0.2, %v448_v47  ;;  %v2005_v53 = vpop.f32.mrb[7].mxu0  ;;  %v2107_v50 = vld [vmem:[#allocation5 + $0x250] sm:$0xff]  }
 0x109   :  { %v2109_v53 = vld [vmem:[#allocation5 + $0x210] sm:$0xff]  }
 0x10a   :  { %v455_v54 = vsel %vm453_vm4, %v448_v47, %v454_v52  ;;  %v2104_v47 = vld [vmem:[#allocation5 + $0x188] sm:$0xff]   ;;  %v2108_v52 = vld [vmem:[#allocation5 + $0x190] sm:$0xff]  }
 0x10b   :  { %v456_v57 = vpack.c.bf16 %v455_v54, %v455_v54  ;;  %v2110_v54 = vld [vmem:[#allocation5 + $0x1d8] sm:$0xff]  }
 0x10d   :  { %2023 = vmatmul.mubr.bf16.vlgmr.msra.gmra.mrb[4].mxu1 %v456_v57  ;;  %2043 = vmatmul.mubr.bf16.vlgmr.msra.gmra.mrb[8].mxu0 %v456_v57  ;;  %v2113_v57 = vld [vmem:[#allocation5 + $0x218] sm:$0xff]  }
 0x10e   :  { %1869 = vmatpush3.bf16.msra.mxu1 %v2072_v55  ;;  %1891 = vmatpush3.bf16.msra.mxu0 %v2073_v56  ;;  %v2111_v55 = vld [vmem:[#allocation5 + $0x258] sm:$0xff]  }
 0x10f   :  { %1870 = vmatprep.subr.bf16.mxu1 %v2074_v58  ;;  %1892 = vmatprep.subr.bf16.mxu0 %v2075_v59  ;;  %v2112_v56 = vld [vmem:[#allocation5 + $0x198] sm:$0xff]   ;;  %v2114_v58 = vld [vmem:[#allocation5 + $0x1e0] sm:$0xff]  }
 0x110   :  { %v2115_v59 = vld [vmem:[#allocation5 + $0x260] sm:$0xff]  }
 0x112   :  { %1871 = vmatpush3.bf16.msra.mxu1 %v2076_v60  ;;  %1893 = vmatpush3.bf16.msra.mxu0 %v2077_v61  ;;  %v2116_v60 = vld [vmem:[#allocation5 + $0x1a0] sm:$0xff]  }
 0x113   :  { %1872 = vmatprep.subr.bf16.mxu1 %v2078_v62  ;;  %1894 = vmatprep.subr.bf16.mxu0 %v2079_v63  ;;  %v2117_v61 = vld [vmem:[#allocation5 + $0x220] sm:$0xff]   ;;  %v2118_v62 = vld [vmem:[#allocation5 + $0x1e8] sm:$0xff]  }
 0x114   :  { %v2119_v63 = vld [vmem:[#allocation5 + $0x268] sm:$0xff]  }
 0x116   :  { %1873 = vmatpush3.bf16.msra.mxu1 %v2080_v0  ;;  %1895 = vmatpush3.bf16.msra.mxu0 %v2081_v1  ;;  %v2120_v0 = vld [vmem:[#allocation5 + $0x1a8] sm:$0xff]  }
 0x117   :  { %1874 = vmatprep.subr.bf16.mxu1 %v2082_v2  ;;  %1896 = vmatprep.subr.bf16.mxu0 %v2083_v3  ;;  %v2121_v1 = vld [vmem:[#allocation5 + $0x228] sm:$0xff]   ;;  %v2122_v2 = vld [vmem:[#allocation5 + $0x1f0] sm:$0xff]  }
 0x118   :  { %v2123_v3 = vld [vmem:[#allocation5 + $0x270] sm:$0xff]  }
 0x11a   :  { %1875 = vmatpush3.bf16.msra.mxu1 %v2084_v4  ;;  %1897 = vmatpush3.bf16.msra.mxu0 %v2085_v5  ;;  %v2124_v4 = vld [vmem:[#allocation5 + $0x1b0] sm:$0xff]  }
 0x11b   :  { %1876 = vmatprep.subr.bf16.mxu1 %v2086_v6  ;;  %1898 = vmatprep.subr.bf16.mxu0 %v2087_v7  ;;  %v2125_v5 = vld [vmem:[#allocation5 + $0x230] sm:$0xff]   ;;  %v2126_v6 = vld [vmem:[#allocation5 + $0x1f8] sm:$0xff]  }
 0x11c   :  { %v2127_v7 = vld [vmem:[#allocation5 + $0x278] sm:$0xff]  }
 0x11e   :  { %1877 = vmatpush3.bf16.msra.mxu1 %v2088_v9  ;;  %1899 = vmatpush3.bf16.msra.mxu0 %v2089_v10  ;;  %v2128_v9 = vld [vmem:[#allocation5 + $0x1b8] sm:$0xff]  }
 0x11f   :  { %1878 = vmatprep.subr.bf16.mxu1 %v2090_v11  ;;  %1900 = vmatprep.subr.bf16.mxu0 %v2091_v12  ;;  %v2129_v10 = vld [vmem:[#allocation5 + $0x238] sm:$0xff]   ;;  %v2130_v11 = vld [vmem:[#allocation5 + $0x200] sm:$0xff]  }
 0x120   :  { %v2131_v12 = vld [vmem:[#allocation5 + $0x280] sm:$0xff]  }
 0x122   :  { %1879 = vmatpush3.bf16.msra.mxu1 %v2092_v13  ;;  %1901 = vmatpush3.bf16.msra.mxu0 %v2093_v14  ;;  %v2132_v13 = vld [vmem:[#allocation5 + $0x1c0] sm:$0xff]  }
 0x123   :  { %1880 = vmatprep.subr.bf16.mxu1 %v2094_v15  ;;  %1902 = vmatprep.subr.bf16.mxu0 %v2095_v16  ;;  %v2133_v14 = vld [vmem:[#allocation5 + $0x240] sm:$0xff]   ;;  %v2134_v15 = vld [vmem:[#allocation5 + $0x2c8] sm:$0xff]  }
 0x124   :  { %v2135_v16 = vld [vmem:[#allocation5 + $0x288] sm:$0xff]  }
 0x126   :  { %1881 = vmatpush3.bf16.msra.mxu1 %v2096_v17  ;;  %1903 = vmatpush3.bf16.msra.mxu0 %v2097_v18  ;;  %v2136_v17 = vld [vmem:[#allocation5 + $0x2d0] sm:$0xff]  }
 0x127   :  { %1882 = vmatprep.subr.bf16.mxu1 %v2098_v19  ;;  %1904 = vmatprep.subr.bf16.mxu0 %v2099_v20  ;;  %v2137_v18 = vld [vmem:[#allocation5 + $0x290] sm:$0xff]   ;;  %v2138_v19 = vld [vmem:[#allocation5 + $0x2d8] sm:$0xff]  }
 0x128   :  { %v2139_v20 = vld [vmem:[#allocation5 + $0x298] sm:$0xff]  }
 0x12a   :  { %1883 = vmatpush3.bf16.msra.mxu1 %v2100_v21  ;;  %1905 = vmatpush3.bf16.msra.mxu0 %v2101_v22  ;;  %v2140_v21 = vld [vmem:[#allocation5 + $0x2e0] sm:$0xff]  }
 0x12b   :  { %1912 = vmatprep.subr.bf16.mxu1 %v2102_v23  ;;  %1934 = vmatprep.subr.bf16.mxu0 %v2103_v24  ;;  %v2141_v22 = vld [vmem:[#allocation5 + $0x2a0] sm:$0xff]   ;;  %v2142_v23 = vld [vmem:[#allocation5 + $0x2e8] sm:$0xff]  }
 0x12c   :  { %v2143_v24 = vld [vmem:[#allocation5 + $0x2a8] sm:$0xff]  }
 0x1e0   :  { %v555_v27 = vpop.f32.mrb[4].mxu1  ;;  %v659_v28 = vpop.f32.mrb[8].mxu0 }
 0x1e1   :  { %v665_v29 = vadd.f32 %v555_v27, %v2372_v40  ;;  %v666_v30 = vadd.f32 %v659_v28, %v253_v26  ;;  %v2024_v31 = vpop.f32.mrb[5].mxu1  ;;  %v2044_v32 = vpop.f32.mrb[9].mxu0  ;;  %v2106_v40 = vld [vmem:[#allocation5 + $0x1d0] sm:$0xff]   ;;  %v2146_v27 = vld [vmem:[#allocation5 + $0x2f8] sm:$0xff]  }
 0x1e2   :  { %v558_v34 = vpop.f32.mrb[6].mxu1  ;;  %v662_v35 = vpop.f32.mrb[10].mxu0  ;;  %v2145_v26 = vld [vmem:[#allocation5 + $0x2b0] sm:$0xff]   ;;  %v2147_v28 = vld [vmem:[#allocation5 + $0x2b8] sm:$0xff]   ;;  %v2150_v31 = vld [vmem:[#allocation5 + $0x348] sm:$0xff]  }
 0x1e3   :  { %vm667_vm5 = vcmp.gt.f32.partialorder %v665_v29, 0.0  ;;  %v669_v36 = vmul.f32 0.2, %v665_v29  ;;  %vm668_vm6 = vcmp.gt.f32.partialorder %v666_v30, 0.0  ;;  %v670_v37 = vmul.f32 0.2, %v666_v30 }
 0x1e4   :  { %v2025_v38 = vpop.f32.mrb[7].mxu1  ;;  %v2045_v39 = vpop.f32.mrb[11].mxu0  ;;  %v2151_v32 = vld [vmem:[#allocation5 + $0x308] sm:$0xff]   ;;  %v2152_v34 = vld [vmem:[#allocation5 + $0x350] sm:$0xff]  }
 0x1e5   :  { %v671_v44 = vsel %vm667_vm5, %v665_v29, %v669_v36  ;;  %v672_v46 = vsel %vm668_vm6, %v666_v30, %v670_v37  ;;  %v2148_v29 = vld [vmem:[#allocation5 + $0x300] sm:$0xff]   ;;  %v2153_v35 = vld [vmem:[#allocation5 + $0x310] sm:$0xff]   ;;  %v2154_v36 = vld [vmem:[#allocation5 + $0x358] sm:$0xff]  }
 0x1e6   :  { %v2390_v8 = vpack.c.bf16 %v671_v44, %v671_v44  ;;  %v674_v42 = vpack.c.bf16 %v672_v46, %v672_v46  ;;  %v2149_v30 = vld [vmem:[#allocation5 + $0x2c0] sm:$0xff]   ;;  %v2155_v37 = vld [vmem:[#allocation5 + $0x318] sm:$0xff]   ;;  %v2158_v44 = vld [vmem:[#allocation5 + $0x368] sm:$0xff]  }
 0x1e7   :  { %v2156_v38 = vld [vmem:[#allocation5 + $0x360] sm:$0xff]   ;;  %v2159_v46 = vld [vmem:[#allocation5 + $0x328] sm:$0xff]  }
 0x1e8   :  { %835 = vmatprep.mubr.bf16.mxu1 %v674_v42  ;;  %1003 = vmatprep.mubr.bf16.mxu0 %v674_v42  ;;  %v2157_v39 = vld [vmem:[#allocation5 + $0x320] sm:$0xff]  }
 0x1e9   :  { %836 = vmatmul.mubr.bf16.vlgmr.msra.gmra.mrb[8].mxu1 %v2390_v8  ;;  %1004 = vmatmul.mubr.bf16.vlgmr.msra.gmra.mrb[12].mxu0 %v2390_v8 }
 0x1ea   :  { %1913 = vmatpush3.bf16.msra.mxu1 %v2104_v47  ;;  %1935 = vmatpush3.bf16.msra.mxu0 %v2105_v48  ;;  %v2162_v47 = vld [vmem:[#allocation5 + $0x378] sm:$0xff]  }
 0x1eb   :  { %1171 = vmatprep.mubr.bf16.mxu1 %v674_v42  ;;  %1339 = vmatprep.mubr.bf16.mxu0 %v674_v42  ;;  %v2161_v42 = vld [vmem:[#allocation5 + $0x330] sm:$0xff]   ;;  %v2163_v48 = vld [vmem:[#allocation5 + $0x338] sm:$0xff]  }
 0x1ec   :  { %1914 = vmatprep.subr.bf16.mxu1 %v2106_v40  ;;  %1936 = vmatprep.subr.bf16.mxu0 %v2107_v50  ;;  %v2164_v40 = vld [vmem:[#allocation5 + $0x380] sm:$0xff]  }
 0x1ed   :  { %v2165_v50 = vld [vmem:[#allocation5 + $0x340] sm:$0xff]  }
 0x1ee   :  { %1915 = vmatpush3.bf16.msra.mxu1 %v2108_v52  ;;  %1937 = vmatpush3.bf16.msra.mxu0 %v2109_v53  ;;  %v2168_v52 = vld [vmem:[#allocation2 + $0x20] sm:$0x1f] }
 0x1ef   :  { %1916 = vmatprep.subr.bf16.mxu1 %v2110_v54  ;;  %1938 = vmatprep.subr.bf16.mxu0 %v2111_v55  ;;  %v73_v53 = vrot.slane %v2168_v52, %v2364_v33 }
 0x1f2   :  { %1917 = vmatpush3.bf16.msra.mxu1 %v2112_v56  ;;  %1939 = vmatpush3.bf16.msra.mxu0 %v2113_v57 }
 0x1f3   :  { %1918 = vmatprep.subr.bf16.mxu1 %v2114_v58  ;;  %1940 = vmatprep.subr.bf16.mxu0 %v2115_v59  ;;  %v324_v58 = vadd.f32 %v2374_v41, %v73_v53  ;;  %v2169_v41 = vld [vmem:[#allocation2 + $0x28] sm:$0x1f] }
 0x1f6   :  { %1919 = vmatpush3.bf16.msra.mxu1 %v2116_v60  ;;  %1941 = vmatpush3.bf16.msra.mxu0 %v2117_v61 }
 0x1f7   :  { %1920 = vmatprep.subr.bf16.mxu1 %v2118_v62  ;;  %1942 = vmatprep.subr.bf16.mxu0 %v2119_v63 }
 0x1fa   :  { %1921 = vmatpush3.bf16.msra.mxu1 %v2120_v0  ;;  %1943 = vmatpush3.bf16.msra.mxu0 %v2121_v1 }
 0x1fb   :  { %1922 = vmatprep.subr.bf16.mxu1 %v2122_v2  ;;  %1944 = vmatprep.subr.bf16.mxu0 %v2123_v3 }
 0x1fe   :  { %1923 = vmatpush3.bf16.msra.mxu1 %v2124_v4  ;;  %1945 = vmatpush3.bf16.msra.mxu0 %v2125_v5 }
 0x1ff   :  { %1924 = vmatprep.subr.bf16.mxu1 %v2126_v6  ;;  %1946 = vmatprep.subr.bf16.mxu0 %v2127_v7 }
 0x202   :  { %1925 = vmatpush3.bf16.msra.mxu1 %v2128_v9  ;;  %1947 = vmatpush3.bf16.msra.mxu0 %v2129_v10  ;;  %v77_v10 = vrot.slane %v2169_v41, %v2364_v33 }
 0x203   :  { %1926 = vmatprep.subr.bf16.mxu1 %v2130_v11  ;;  %1948 = vmatprep.subr.bf16.mxu0 %v2131_v12  ;;  %v2170_v11 = vld [vmem:[#allocation2 + $0x30] sm:$0x1f] }
 0x204   :  { %v81_v12 = vrot.slane %v2170_v11, %v2364_v33 }
 0x206   :  { %1927 = vmatpush3.bf16.msra.mxu1 %v2132_v13  ;;  %1949 = vmatpush3.bf16.msra.mxu0 %v2133_v14 }
 0x207   :  { %1956 = vmatprep.subr.bf16.mxu1 %v2134_v15  ;;  %1978 = vmatprep.subr.bf16.mxu0 %v2150_v31 }
 0x209   :  { %1172 = vmatmul.mubr.bf16.vlgmr.msra.gmra.mrb[12].mxu1 %v2390_v8  ;;  %1340 = vmatmul.mubr.bf16.vlgmr.msra.gmra.mrb[16].mxu0 %v2390_v8  ;;  %v2160_v8 = vld [vmem:[#allocation5 + $0x370] sm:$0xff]  }
 0x20a   :  { %1957 = vmatpush3.bf16.msra.mxu1 %v2135_v16  ;;  %1979 = vmatpush3.bf16.msra.mxu0 %v2151_v32  ;;  %v326_v16 = vadd.f32 %v2378_v43, %v77_v10  ;;  %v2171_v43 = vld [vmem:[#allocation2 + $0x38] sm:$0x1f] }
 0x20b   :  { %1958 = vmatprep.subr.bf16.mxu1 %v2136_v17  ;;  %1980 = vmatprep.subr.bf16.mxu0 %v2152_v34  ;;  %v395_v17 = vadd.f32 %v2382_v49, %v81_v12  ;;  %v85_v49 = vrot.slane %v2171_v43, %v2364_v33 }
 0x20e   :  { %1959 = vmatpush3.bf16.msra.mxu1 %v2137_v18  ;;  %1981 = vmatpush3.bf16.msra.mxu0 %v2153_v35  ;;  %v397_v35 = vadd.f32 %v2384_v51, %v85_v49 }
 0x20f   :  { %1960 = vmatprep.subr.bf16.mxu1 %v2138_v19  ;;  %1982 = vmatprep.subr.bf16.mxu0 %v2154_v36 }
 0x212   :  { %1961 = vmatpush3.bf16.msra.mxu1 %v2139_v20  ;;  %1983 = vmatpush3.bf16.msra.mxu0 %v2155_v37 }
 0x213   :  { %1962 = vmatprep.subr.bf16.mxu1 %v2140_v21  ;;  %1984 = vmatprep.subr.bf16.mxu0 %v2156_v38 }
 0x216   :  { %1963 = vmatpush3.bf16.msra.mxu1 %v2141_v22  ;;  %1985 = vmatpush3.bf16.msra.mxu0 %v2157_v39 }
 0x217   :  { %1964 = vmatprep.subr.bf16.mxu1 %v2142_v23  ;;  %1986 = vmatprep.subr.bf16.mxu0 %v2158_v44 }
 0x21a   :  { %1965 = vmatpush3.bf16.msra.mxu1 %v2143_v24  ;;  %1987 = vmatpush3.bf16.msra.mxu0 %v2159_v46 }
 0x21b   :  { %1966 = vmatprep.subr.bf16.mxu1 %v2144_v25  ;;  %1988 = vmatprep.subr.bf16.mxu0 %v2160_v8 }
 0x21e   :  { %1967 = vmatpush3.bf16.msra.mxu1 %v2145_v26  ;;  %1989 = vmatpush3.bf16.msra.mxu0 %v2161_v42 }
 0x21f   :  { %1968 = vmatprep.subr.bf16.mxu1 %v2146_v27  ;;  %1990 = vmatprep.subr.bf16.mxu0 %v2162_v47 }
 0x222   :  { %1969 = vmatpush3.bf16.msra.mxu1 %v2147_v28  ;;  %1991 = vmatpush3.bf16.msra.mxu0 %v2163_v48 }
 0x223   :  { %1970 = vmatprep.subr.bf16.mxu1 %v2148_v29  ;;  %1992 = vmatprep.subr.bf16.mxu0 %v2164_v40 }
 0x226   :  { %1971 = vmatpush3.bf16.msra.mxu1 %v2149_v30  ;;  %1993 = vmatpush3.bf16.msra.mxu0 %v2165_v50 }
 0x2bc   :  { %v1884_v54 = vpop.f32.mrb[8].mxu1  ;;  %v1906_v55 = vpop.f32.mrb[12].mxu0 }
 0x2bd   :  { %v1885_v56 = vpop.f32.mrb[9].mxu1  ;;  %v1907_v57 = vpop.f32.mrb[13].mxu0 }
 0x2be   :  { %v1886_v59 = vadd.f32 %v1885_v56, %v1884_v54  ;;  %v1908_v60 = vadd.f32 %v1907_v57, %v1906_v55  ;;  %v1887_v61 = vpop.f32.mrb[10].mxu1  ;;  %v1909_v62 = vpop.f32.mrb[14].mxu0 }
 0x2bf   :  { %v1888_v63 = vpop.f32.mrb[11].mxu1  ;;  %v1910_v0 = vpop.f32.mrb[15].mxu0 }
 0x2c0   :  { %v1347_v1 = vadd.f32 %v1886_v59, %v2380_v45  ;;  %v1348_v2 = vadd.f32 %v1908_v60, %v324_v58 }
 0x2c2   :  { %vm1351_vm7 = vcmp.gt.f32.partialorder %v1347_v1, 0.0  ;;  %v1355_v3 = vmul.f32 0.2, %v1347_v1  ;;  %v1356_v4 = vmul.f32 0.2, %v1348_v2  ;;  %vm1352_vm8 = vcmp.gt.f32.partialorder %v1348_v2, 0.0 }
 0x2c4   :  { %v1359_v5 = vsel %vm1351_vm7, %v1347_v1, %v1355_v3  ;;  %v1360_v6 = vsel %vm1352_vm8, %v1348_v2, %v1356_v4 }
 0x2c5   :  { %v1363_v7 = vpack.c.bf16 %v1359_v5, %v1359_v5  ;;  %v1364_v9 = vpack.c.bf16 %v1360_v6, %v1360_v6 }
 0x2c7   :  { %1655 = vmatprep.mubr.bf16.mxu1 %v1364_v9 }
 0x2c8   :  { %1656 = vmatmul.mubr.bf16.vlgmr.msra.gmra.mrb[16].mxu1 %v1363_v7 }
 0x2dc   :  { %v1928_v13 = vpop.f32.mrb[12].mxu1  ;;  %v1950_v14 = vpop.f32.mrb[16].mxu0 }
 0x2dd   :  { %v1929_v45 = vpop.f32.mrb[13].mxu1  ;;  %v1951_v15 = vpop.f32.mrb[17].mxu0 }
 0x2de   :  { %v1930_v18 = vadd.f32 %v1929_v45, %v1928_v13  ;;  %v1952_v19 = vadd.f32 %v1951_v15, %v1950_v14  ;;  %v1931_v20 = vpop.f32.mrb[14].mxu1  ;;  %v1953_v21 = vpop.f32.mrb[18].mxu0 }
 0x2df   :  { %v1932_v22 = vpop.f32.mrb[15].mxu1  ;;  %v1954_v23 = vpop.f32.mrb[19].mxu0 }
 0x2e0   :  { %v1349_v24 = vadd.f32 %v1930_v18, %v326_v16  ;;  %v1350_v25 = vadd.f32 %v1952_v19, %v395_v17 }
 0x2e2   :  { %vm1353_vm9 = vcmp.gt.f32.partialorder %v1349_v24, 0.0  ;;  %v1357_v26 = vmul.f32 0.2, %v1349_v24  ;;  %v1358_v27 = vmul.f32 0.2, %v1350_v25  ;;  %vm1354_vm10 = vcmp.gt.f32.partialorder %v1350_v25, 0.0 }
 0x2e4   :  { %v1361_v28 = vsel %vm1353_vm9, %v1349_v24, %v1357_v26  ;;  %v1362_v29 = vsel %vm1354_vm10, %v1350_v25, %v1358_v27 }
 0x2e5   :  { %v1365_v30 = vpack.c.bf16 %v1361_v28, %v1361_v28  ;;  %v1366_v31 = vpack.c.bf16 %v1362_v29, %v1362_v29 }
 0x2e7   :  { %1695 = vmatprep.mubr.bf16.mxu0 %v1366_v31 }
 0x2e8   :  { %1696 = vmatmul.mubr.bf16.vlgmr.msra.gmra.mrb[20].mxu0 %v1365_v30 }
 0x39b   :  { %v1972_v32 = vpop.f32.mrb[16].mxu1 }
 0x39c   :  { %v1973_v34 = vpop.f32.mrb[17].mxu1 }
 0x39d   :  { %v1974_v36 = vadd.f32 %v1973_v34, %v1972_v32  ;;  %v1975_v37 = vpop.f32.mrb[18].mxu1 }
 0x39e   :  { %v1976_v38 = vpop.f32.mrb[19].mxu1 }
 0x39f   :  { %v1658_v39 = vadd.f32 %v1974_v36, %v397_v35 }
 0x3bb   :  { %v1994_v44 = vpop.f32.mrb[20].mxu0 }
 0x3bc   :  { %v1995_v46 = vpop.f32.mrb[21].mxu0 }
 0x3bd   :  { %v1996_v8 = vadd.f32 %v1995_v46, %v1994_v44  ;;  %v1997_v42 = vpop.f32.mrb[22].mxu0 }
 0x3be   :  { %v1998_v47 = vpop.f32.mrb[23].mxu0 }
 0x3bf   :  { %v1698_v48 = vadd.f32 %v1996_v8, %v1658_v39 }
 0x3c1   :  { %2166 = vtanh.f32 %v1698_v48 }
 0x3cb   :  { %v2167_v33 = vpop.eup %2166 }
 0x3cc   :  { %1705 = vst.msk [vmem:[#allocation7] sm:$0xff] %vm1704_vm11, %v2167_v33 }
 0x3cd   :  { %2227 = shalt.err (!%p2224_p6)
}
 0x3ce   :  { %s2228_s20 = scalar_lea.hbm %s2421_s4, 128 }
 0x3cf   :  { %p2229_p7 = scmp.ne.s32.totalorder %s2421_s4, %s2228_s20  ;;  %p2232_p8 = scmp.lt.u32.totalorder %s2228_s20, %s2421_s4 }
 0x3d1   :  { %p2234_p9 = pnand %p2232_p8, %p2229_p7 }
 0x3d3   :  { %2237 = shalt.err (!%p2234_p9)
}
 0x3d4   :  { %1715 = dma.vmem_to_hbm [thread:$0]  %s1713_s16, 128, %s2421_s4, [#allocation4]  }
 0x3d5   :  { %2242 = dma.done.wait [#allocation4], 128  }
 0x3d6   :  { %2243 = vsyncadd [#allocation4], 4294967168 }
 0x3d7   :  { %1719 = vsyncpa [#allocation3], 1 }
 0x3d8   :  { %1720 = vsyncpa [#allocation6], 1 }
 0x3d9   :  { %1721 = vsyncpa [#allocation4], 1 }

</bundles_post_ra>
